<compile_context>
chip_gen: v7x
topology: tpu7x:2x2x1
jax: 0.10.0
libtpu: 0.0.40
codegen_flags: <defaults>
</compile_context>

<pallas_src>
import functools

import jax
import jax.numpy as jnp
from jax.experimental import pallas as pl
from jax.experimental.pallas import tpu as pltpu

LANE = 128            # TPU lane width; output is padded to a multiple of this.
NEG_BIG = -1e30       # bias for padded logit columns -> exp() underflows to 0.


def mlp_kernel(x_ref, w1_ref, b1_ref, w2_ref, b2_ref, o_ref):
    # ---- h = relu(x @ W1 + b1), f32 accumulation on the MXU ----
    h = jnp.dot(x_ref[...], w1_ref[...], preferred_element_type=jnp.float32)
    h = jnp.maximum(h + b1_ref[...], 0.0)

    # TODO(synk): F.dropout(training=self.training) is identity in eval mode;
    # training-mode stochastic masking is intentionally omitted.

    # ---- logits = h @ W2 + b2 (out_dim padded to 128 lanes) ----
    logits = jnp.dot(h.astype(w2_ref.dtype), w2_ref[...],
                     preferred_element_type=jnp.float32)
    logits = logits + b2_ref[...]   # padded cols: 0 + (-1e30) -> masked out

    # ---- log_softmax over dim=1 (class axis), numerically stable ----
    m = jnp.max(logits, axis=1, keepdims=True)
    shifted = logits - m
    lse = jnp.log(jnp.sum(jnp.exp(shifted), axis=1, keepdims=True))
    o_ref[...] = (shifted - lse).astype(o_ref.dtype)


def prepare_params(w1, b1, w2, b2):
    """One-time preprocessing (hoisted out of the per-call hot path):
    transpose weights to (in, hid)/(hid, out_pad), pad out_dim to 128 lanes,
    cast weights to bf16, keep biases f32 (padded bias = -1e30)."""
    out_dim, hid_dim = w2.shape
    out_pad = ((out_dim + LANE - 1) // LANE) * LANE

    w1_t = w1.T.astype(jnp.bfloat16)                                  # (in, hid)
    b1_row = b1.reshape(1, -1).astype(jnp.float32)                    # (1, hid)

    w2_t = jnp.zeros((hid_dim, out_pad), jnp.bfloat16)
    w2_t = w2_t.at[:, :out_dim].set(w2.T.astype(jnp.bfloat16))        # (hid, out_pad)
    b2_row = jnp.full((1, out_pad), NEG_BIG, jnp.float32)
    b2_row = b2_row.at[:, :out_dim].set(b2.astype(jnp.float32))       # (1, out_pad)

    return w1_t, b1_row, w2_t, b2_row, out_dim


@functools.partial(jax.jit, static_argnames=("out_dim", "tile_n"))
def mlp_forward(x, w1_t, b1_row, w2_t, b2_row, out_dim, tile_n=512):
    """x: (N, in_dim) f32/bf16; params from prepare_params(). Returns (N, out_dim) f32."""
    n, in_dim = x.shape
    hid_dim = w1_t.shape[1]
    out_pad = w2_t.shape[1]

    tile_n = min(tile_n, n)               # full-array block for small N
    grid = (pl.cdiv(n, tile_n),)

    xb = x.astype(jnp.bfloat16)

    out_padded = pl.pallas_call(
        mlp_kernel,
        out_shape=jax.ShapeDtypeStruct((n, out_pad), jnp.float32),
        grid_spec=pltpu.PrefetchScalarGridSpec(
            num_scalar_prefetch=0,
            grid=grid,
            in_specs=[
                # x rows stream (double-buffered) over the grid
                pl.BlockSpec((tile_n, in_dim), lambda i: (i, 0)),
                # weights / biases: constant block index -> VMEM-resident
                pl.BlockSpec((in_dim, hid_dim), lambda i: (0, 0)),
                pl.BlockSpec((1, hid_dim), lambda i: (0, 0)),
                pl.BlockSpec((hid_dim, out_pad), lambda i: (0, 0)),
                pl.BlockSpec((1, out_pad), lambda i: (0, 0)),
            ],
            out_specs=pl.BlockSpec((tile_n, out_pad), lambda i: (i, 0)),
        ),
        compiler_params=pltpu.CompilerParams(
            # N-tiles are independent -> shard across TensorCores on v7x
            dimension_semantics=("parallel",),
            # explicit scoped-VMEM limit: safe on v5e (16 MiB default),
            # v6e/v7x (32 MiB default, 64 MiB physical on v7x).
            vmem_limit_bytes=32 * 1024 * 1024,
        ),
    )(xb, w1_t, b1_row, w2_t, b2_row)

    # drop the lane-padding columns
    return out_padded[:, :out_dim]


def _torch_linear_init(key, out_features, in_features):
    """Deterministic init mimicking nn.Linear default (uniform +/- 1/sqrt(fan_in))."""
    kw, kb = jax.random.split(key)
    bound = 1.0 / jnp.sqrt(jnp.float32(in_features))
    w = jax.random.uniform(kw, (out_features, in_features), jnp.float32, -bound, bound)
    b = jax.random.uniform(kb, (out_features,), jnp.float32, -bound, bound)
    return w, b


if __name__ == "__main__":
    key = jax.random.PRNGKey(0)
    k_x, k_l1, k_l2 = jax.random.split(key, 3)

    # Small shapes consistent with the module: N nodes, in_dim -> hid_dim -> out_dim.
    # N=256 with tile_n=128 exercises a 2-step row grid.
    N, in_dim, hid_dim, out_dim = 256, 16, 32, 8
    TILE_N = 128

    x = jax.random.normal(k_x, (N, in_dim), jnp.float32)
    w1, b1 = _torch_linear_init(k_l1, hid_dim, in_dim)
    w2, b2 = _torch_linear_init(k_l2, out_dim, hid_dim)

    params = prepare_params(w1, b1, w2, b2)   # one-time: transpose / pad / cast
    out = mlp_forward(x, *params, tile_n=TILE_N)
    jax.block_until_ready(out)
    assert out.shape == (N, out_dim)

    # Reference (same math as the PyTorch module in eval mode), emulating the
    # kernel's bf16 storage of x / W1 / W2 / h with f32 accumulation.
    bf = lambda a: a.astype(jnp.bfloat16).astype(jnp.float32)
    h_ref = jnp.maximum(bf(x) @ bf(w1).T + b1, 0.0)
    logits_ref = bf(h_ref) @ bf(w2).T + b2
    ref = jax.nn.log_softmax(logits_ref, axis=1)
    assert jnp.allclose(out, ref, atol=5e-3, rtol=5e-3), "mismatch vs reference"

    print("KERNEL_OK")
</pallas_src>

<mosaic_0001>
module attributes {stable_mosaic.version = 11 : i64} {
  func.func @mlp_kernel(%arg0: i32, %arg1: memref<128x16xbf16, #tpu.memory_space<vmem>>, %arg2: memref<16x32xbf16, #tpu.memory_space<vmem>>, %arg3: memref<1x32xf32, #tpu.memory_space<vmem>>, %arg4: memref<32x128xbf16, #tpu.memory_space<vmem>>, %arg5: memref<1x128xf32, #tpu.memory_space<vmem>>, %arg6: memref<128x128xf32, #tpu.memory_space<vmem>>) attributes {dimension_semantics = [#tpu.dimension_semantics<parallel>], iteration_bounds = array<i64: 2>, scalar_prefetch = 0 : i64, scratch_operands = 0 : i64, tpu.core_type = #tpu.core_type<tc>, window_params = [{transform_indices = @transform_0, window_bounds = array<i64: 128, 16>}, {pipeline_mode = #tpu.pipeline_mode<synchronous>, transform_indices = @transform_1, window_bounds = array<i64: 16, 32>}, {pipeline_mode = #tpu.pipeline_mode<synchronous>, transform_indices = @transform_2, window_bounds = array<i64: 1, 32>}, {pipeline_mode = #tpu.pipeline_mode<synchronous>, transform_indices = @transform_3, window_bounds = array<i64: 32, 128>}, {pipeline_mode = #tpu.pipeline_mode<synchronous>, transform_indices = @transform_4, window_bounds = array<i64: 1, 128>}, {transform_indices = @transform_5, window_bounds = array<i64: 128, 128>}]} {
    %c0 = arith.constant 0 : index
    %c0_0 = arith.constant 0 : index
    %0 = vector.load %arg1[%c0, %c0_0] : memref<128x16xbf16, #tpu.memory_space<vmem>>, vector<128x16xbf16>
    %c0_1 = arith.constant 0 : index
    %c0_2 = arith.constant 0 : index
    %1 = vector.load %arg2[%c0_1, %c0_2] : memref<16x32xbf16, #tpu.memory_space<vmem>>, vector<16x32xbf16>
    %cst = arith.constant dense<0.000000e+00> : vector<128x32xf32>
    %2 = tpu.matmul %0, %1, %cst {dimension_numbers = #tpu.dot_dimension_numbers<[1], [0], [0], [1], [0, 0, 1, 1], [], []>} : vector<128x16xbf16>, vector<16x32xbf16>, vector<128x32xf32> -> vector<128x32xf32>
    %c0_3 = arith.constant 0 : index
    %c0_4 = arith.constant 0 : index
    %3 = vector.load %arg3[%c0_3, %c0_4] : memref<1x32xf32, #tpu.memory_space<vmem>>, vector<1x32xf32>
    %4 = vector.broadcast %3 : vector<1x32xf32> to vector<128x32xf32>
    %5 = arith.addf %2, %4 : vector<128x32xf32>
    %cst_5 = arith.constant 0.000000e+00 : f32
    %6 = vector.broadcast %cst_5 : f32 to vector<128x32xf32>
    %7 = arith.maximumf %5, %6 : vector<128x32xf32>
    %8 = arith.truncf %7 : vector<128x32xf32> to vector<128x32xbf16>
    %c0_6 = arith.constant 0 : index
    %c0_7 = arith.constant 0 : index
    %9 = vector.load %arg4[%c0_6, %c0_7] : memref<32x128xbf16, #tpu.memory_space<vmem>>, vector<32x128xbf16>
    %cst_8 = arith.constant dense<0.000000e+00> : vector<128x128xf32>
    %10 = tpu.matmul %8, %9, %cst_8 {dimension_numbers = #tpu.dot_dimension_numbers<[1], [0], [0], [1], [0, 0, 1, 1], [], []>} : vector<128x32xbf16>, vector<32x128xbf16>, vector<128x128xf32> -> vector<128x128xf32>
    %c0_9 = arith.constant 0 : index
    %c0_10 = arith.constant 0 : index
    %11 = vector.load %arg5[%c0_9, %c0_10] : memref<1x128xf32, #tpu.memory_space<vmem>>, vector<1x128xf32>
    %12 = vector.broadcast %11 : vector<1x128xf32> to vector<128x128xf32>
    %13 = arith.addf %10, %12 : vector<128x128xf32>
    %cst_11 = arith.constant dense<0xFF800000> : vector<128xf32>
    %14 = vector.multi_reduction <maximumf>, %13, %cst_11 [1] : vector<128x128xf32> to vector<128xf32>
    %15 = vector.shape_cast %14 : vector<128xf32> to vector<128x1xf32>
    %16 = vector.broadcast %15 : vector<128x1xf32> to vector<128x128xf32>
    %17 = arith.subf %13, %16 : vector<128x128xf32>
    %18 = math.exp %17 : vector<128x128xf32>
    %cst_12 = arith.constant dense<0.000000e+00> : vector<128xf32>
    %19 = vector.multi_reduction <add>, %18, %cst_12 [1] : vector<128x128xf32> to vector<128xf32>
    %20 = vector.shape_cast %19 : vector<128xf32> to vector<128x1xf32>
    %21 = math.log %20 : vector<128x1xf32>
    %22 = vector.broadcast %21 : vector<128x1xf32> to vector<128x128xf32>
    %23 = arith.subf %17, %22 : vector<128x128xf32>
    %c0_13 = arith.constant 0 : index
    %c0_14 = arith.constant 0 : index
    %24 = vector.load %arg6[%c0_13, %c0_14] : memref<128x128xf32, #tpu.memory_space<vmem>>, vector<128x128xf32>
    tpu.vector_store %arg6[%c0_13, %c0_14], %23 {strides = array<i32>} : memref<128x128xf32, #tpu.memory_space<vmem>>, vector<128x128xf32>,
    return
  }
  func.func @transform_0(%arg0: i32) -> (i32, i32) {
    %c0_i32 = arith.constant 0 : i32
    %c0_i32_0 = arith.constant 0 : i32
    return %arg0, %c0_i32 : i32, i32
  }
  func.func @transform_1(%arg0: i32) -> (i32, i32) {
    %c0_i32 = arith.constant 0 : i32
    %c0_i32_0 = arith.constant 0 : i32
    %c0_i32_1 = arith.constant 0 : i32
    return %c0_i32, %c0_i32_0 : i32, i32
  }
  func.func @transform_2(%arg0: i32) -> (i32, i32) {
    %c0_i32 = arith.constant 0 : i32
    %c0_i32_0 = arith.constant 0 : i32
    %c0_i32_1 = arith.constant 0 : i32
    return %c0_i32, %c0_i32_0 : i32, i32
  }
  func.func @transform_3(%arg0: i32) -> (i32, i32) {
    %c0_i32 = arith.constant 0 : i32
    %c0_i32_0 = arith.constant 0 : i32
    %c0_i32_1 = arith.constant 0 : i32
    return %c0_i32, %c0_i32_0 : i32, i32
  }
  func.func @transform_4(%arg0: i32) -> (i32, i32) {
    %c0_i32 = arith.constant 0 : i32
    %c0_i32_0 = arith.constant 0 : i32
    %c0_i32_1 = arith.constant 0 : i32
    return %c0_i32, %c0_i32_0 : i32, i32
  }
  func.func @transform_5(%arg0: i32) -> (i32, i32) {
    %c0_i32 = arith.constant 0 : i32
    %c0_i32_0 = arith.constant 0 : i32
    return %arg0, %c0_i32 : i32, i32
  }
}

</mosaic_0001>

<bundles_post_ra>
// kernel: mlp_forward.1
= control target key start
LH: loop header
LB: loop body
LE: loop exit
PB: predicated region body
PF: predicated region fallthrough
CT: control target
= control target key end

     0   :  { %s1041_s18 = smov 0   ;;  %s1195_s0 = inlined_call_operand.vmem [shape: bf16[256,16], index: 0, kind: input, shape index: {}]   ;;  %s1196_s1 = inlined_call_operand.vmem [shape: bf16[16,32], index: 1, kind: input, shape index: {}]   ;;  %s1197_s2 = inlined_call_operand.vmem [shape: f32[1,32], index: 2, kind: input, shape index: {}]   ;;  %s1198_s3 = inlined_call_operand.vmem [shape: bf16[32,128], index: 3, kind: input, shape index: {}]   ;;  %s1199_s4 = inlined_call_operand.vmem [shape: f32[1,128], index: 4, kind: input, shape index: {}]   ;;  %s1200_s5 = inlined_call_operand.vmem [shape: f32[256,128], index: 5, kind: output, shape index: {}]  }
   0x1 LB: > { %s823_s19 = sadd.s32 4294967295, %s1009_s18   ;;  %p827_p0 = scmp.ge.s32.totalorder %s1009_s18, 1  ;;  %s1009_s18 = sphi %s1041_s18, %s15_s18  }
   0x2   : > { %p188_p1 = scmp.lt.s32.totalorder %s1009_s18, 3 }
   0x4   : > { %p189_p2 = pnand %p827_p0, %p188_p1 }
   0x5   : > { %v928_v0 = vld [vmem:[%s1196_s1] sm:$0xff] (!%p189_p2)   ;;  %s828_s22 = sshll.u32 (!%p189_p2), %s823_s19, 4  ;;  %vm300_vm0 = vcmask (!%p189_p2), 130048   ;;  %v938_v10 = vld [vmem:[%s1198_s3 + $0x8] sm:$0xff] (!%p189_p2)   ;;  %vm469_vm1 = vcmask (!%p189_p2), 261120  }
   0x6   : > { %192 = sbr.rel (%p189_p2) target bundleno = 801 (0x321), region = 40  ;;  %p217_p3 = scmp.lt.s32.totalorder (!%p189_p2), %s828_s22, 31  ;;  %882 = vmatprep.subr.bf16.mxu0 (!%p189_p2), %v928_v0  ;;  %v937_v9 = vld [vmem:[%s1198_s3] sm:$0xff] (!%p189_p2)  }
   0x7   : > { %883 = vmatpush3.bf16.msra.mxu0 (!%p189_p2), %v928_v0  ;;  %900 = vmatprep.subr.bf16.mxu1 (!%p189_p2), %v937_v9  ;;  %v832_v11 = vld [vmem:[%s1197_s2] ss:$0 sm:$0xff] (!%p189_p2) }
   0x8   : > { %901 = vmatpush3.bf16.msra.mxu1 (!%p189_p2), %v937_v9 }
   0x9   : > { %902 = vmatprep.subr.bf16.mxu1 (!%p189_p2), %v938_v10 }
   0xc   : > { %903 = vmatpush3.bf16.msra.mxu1 (!%p189_p2), %v938_v10 }
   0xd   : > { %s1202_s22 = smov (!%p217_p3, %s828_s22), 31 }
   0xe   : > { %s829_s23 = sshll.u32 %s1202_s22, 2  ;;  %s831_s10 = sshll.u32 %s1202_s22, 3 }
   0xf   : > { %s220_s26 = scalar_lea.vmem %s1195_s0, %s829_s23  ;;  %s1158_s13 = scalar_lea.vmem %s1200_s5, %s831_s10 }
  0x10   : > { %v929_v1 = vld [vmem:[%s220_s26] sm:$0xff]   ;;  %v930_v2 = vld [vmem:[%s220_s26 + $0x8] sm:$0xff]   ;;  %v931_v3 = vld [vmem:[%s220_s26 + $0x10] sm:$0xff]  }
  0x11   : > { %884 = vmatprep.mubr.msk.bf16.mxu0 %vm300_vm0, %v929_v1  ;;  %v932_v4 = vld [vmem:[%s220_s26 + $0x18] sm:$0xff]   ;;  %v933_v5 = vld [vmem:[%s220_s26 + $0x20] sm:$0xff]   ;;  %v934_v6 = vld [vmem:[%s220_s26 + $0x28] sm:$0xff]  }
  0x12   : > { %885 = vmatmul.mubr.msk.bf16.vlgmr.msra.gmra.mrb[0].mxu0 %vm300_vm0, %v930_v2  ;;  %v935_v7 = vld [vmem:[%s220_s26 + $0x30] sm:$0xff]   ;;  %v936_v8 = vld [vmem:[%s220_s26 + $0x38] sm:$0xff]  }
  0x13   : > { %888 = vmatprep.mubr.msk.bf16.mxu0 %vm300_vm0, %v931_v3 }
  0x1a   : > { %889 = vmatmul.mubr.msk.bf16.gmra.mrb[4].mxu0 %vm300_vm0, %v932_v4  ;;  %v850_v4 = vld [vmem:[%s1199_s4] ss:$0 sm:$0xff] }
  0x1b   : > { %892 = vmatprep.mubr.msk.bf16.mxu0 %vm300_vm0, %v933_v5 }
  0x22   : > { %893 = vmatmul.mubr.msk.bf16.gmra.mrb[8].mxu0 %vm300_vm0, %v934_v6 }
  0x23   : > { %896 = vmatprep.mubr.msk.bf16.mxu0 %vm300_vm0, %v935_v7 }
  0x2a   : > { %897 = vmatmul.mubr.msk.bf16.gmra.mrb[12].mxu0 %vm300_vm0, %v936_v8 }
  0xe5   : > { %v886_v12 = vpop.f32.mrb[0].mxu0 }
  0xe6   : > { %v368_v13 = vadd.f32 %v886_v12, %v832_v11  ;;  %v359_v14 = vpop.f32.mrb[1].mxu0 }
  0xe7   : > { %v360_v15 = vadd.f32 %v832_v11, %v359_v14  ;;  %v887_v16 = vpop.f32.mrb[2].mxu0 }
  0xe8   : > { %v371_v17 = vadd.f32 %v887_v16, %v832_v11  ;;  %v362_v18 = vpop.f32.mrb[3].mxu0  ;;  %v424_v20 = vmax.f32 %v368_v13, 0.0 }
  0xe9   : > { %v363_v19 = vadd.f32 %v832_v11, %v362_v18  ;;  %v422_v22 = vmax.f32 %v360_v15, 0.0 }
  0xea   : > { %v425_v21 = vmax.f32 %v371_v17, 0.0 }
  0xeb   : > { %v423_v23 = vmax.f32 %v363_v19, 0.0 }
  0xec   : > { %v439_v24 = vpack.c.bf16 %v425_v21, %v424_v20 }
  0xed   : > { %v890_v25 = vpop.f32.mrb[4].mxu0  ;;  %v438_v26 = vpack.c.bf16 %v423_v23, %v422_v22 }
  0xee   : > { %v384_v27 = vadd.f32 %v890_v25, %v832_v11  ;;  %v375_v28 = vpop.f32.mrb[5].mxu0 }
  0xef   : > { %v376_v29 = vadd.f32 %v832_v11, %v375_v28  ;;  %v891_v30 = vpop.f32.mrb[6].mxu0  ;;  %904 = vmatprep.mubr.msk.bf16.mxu1 %vm469_vm1, %v438_v26 }
  0xf0   : > { %v428_v31 = vmax.f32 %v384_v27, 0.0  ;;  %v387_v32 = vadd.f32 %v891_v30, %v832_v11  ;;  %v378_v33 = vpop.f32.mrb[7].mxu0  ;;  %905 = vmatmul.mubr.msk.bf16.vlgmr.msra.gmra.mrb[0].mxu1 %vm469_vm1, %v439_v24 }
  0xf1   : > { %v379_v34 = vadd.f32 %v832_v11, %v378_v33  ;;  %v426_v36 = vmax.f32 %v376_v29, 0.0 }
  0xf2   : > { %v429_v35 = vmax.f32 %v387_v32, 0.0 }
  0xf3   : > { %v427_v37 = vmax.f32 %v379_v34, 0.0 }
  0xf4   : > { %v441_v38 = vpack.c.bf16 %v429_v35, %v428_v31 }
  0xf5   : > { %v440_v39 = vpack.c.bf16 %v427_v37, %v426_v36  ;;  %v894_v40 = vpop.f32.mrb[8].mxu0 }
  0xf6   : > { %v400_v41 = vadd.f32 %v894_v40, %v832_v11  ;;  %v391_v42 = vpop.f32.mrb[9].mxu0 }
  0xf7   : > { %v392_v43 = vadd.f32 %v832_v11, %v391_v42  ;;  %v895_v44 = vpop.f32.mrb[10].mxu0  ;;  %908 = vmatprep.mubr.msk.bf16.mxu1 %vm469_vm1, %v440_v39 }
  0xf8   : > { %v432_v45 = vmax.f32 %v400_v41, 0.0  ;;  %v403_v46 = vadd.f32 %v895_v44, %v832_v11  ;;  %v394_v47 = vpop.f32.mrb[11].mxu0  ;;  %909 = vmatmul.mubr.msk.bf16.gmra.mrb[4].mxu1 %vm469_vm1, %v441_v38 }
  0xf9   : > { %v395_v48 = vadd.f32 %v832_v11, %v394_v47  ;;  %v430_v50 = vmax.f32 %v392_v43, 0.0 }
  0xfa   : > { %v433_v49 = vmax.f32 %v403_v46, 0.0 }
  0xfb   : > { %v431_v51 = vmax.f32 %v395_v48, 0.0 }
  0xfc   : > { %v443_v52 = vpack.c.bf16 %v433_v49, %v432_v45 }
  0xfd   : > { %v442_v53 = vpack.c.bf16 %v431_v51, %v430_v50  ;;  %v898_v54 = vpop.f32.mrb[12].mxu0 }
  0xfe   : > { %v416_v55 = vadd.f32 %v898_v54, %v832_v11  ;;  %v407_v56 = vpop.f32.mrb[13].mxu0 }
  0xff   : > { %v408_v57 = vadd.f32 %v832_v11, %v407_v56  ;;  %v899_v58 = vpop.f32.mrb[14].mxu0  ;;  %912 = vmatprep.mubr.msk.bf16.mxu1 %vm469_vm1, %v442_v53 }
 0x100   : > { %v436_v59 = vmax.f32 %v416_v55, 0.0  ;;  %v419_v60 = vadd.f32 %v899_v58, %v832_v11  ;;  %v410_v61 = vpop.f32.mrb[15].mxu0  ;;  %913 = vmatmul.mubr.msk.bf16.gmra.mrb[8].mxu1 %vm469_vm1, %v443_v52 }
 0x101   : > { %v411_v62 = vadd.f32 %v832_v11, %v410_v61  ;;  %v434_v0 = vmax.f32 %v408_v57, 0.0 }
 0x102   : > { %v437_v63 = vmax.f32 %v419_v60, 0.0 }
 0x103   : > { %v435_v1 = vmax.f32 %v411_v62, 0.0 }
 0x104   : > { %v445_v2 = vpack.c.bf16 %v437_v63, %v436_v59 }
 0x105   : > { %v444_v3 = vpack.c.bf16 %v435_v1, %v434_v0 }
 0x107   : > { %916 = vmatprep.mubr.msk.bf16.mxu1 %vm469_vm1, %v444_v3 }
 0x108   : > { %917 = vmatmul.mubr.msk.bf16.gmra.mrb[12].mxu1 %vm469_vm1, %v445_v2 }
 0x1c3   : > { %v906_v5 = vpop.f32.mrb[0].mxu1 }
 0x1c4   : > { %v537_v6 = vadd.f32 %v906_v5, %v850_v4  ;;  %v528_v7 = vpop.f32.mrb[1].mxu1 }
 0x1c5   : > { %v529_v8 = vadd.f32 %v850_v4, %v528_v7  ;;  %v907_v9 = vpop.f32.mrb[2].mxu1 }
 0x1c6   : > { %595 = vmax.xlane.f32.xlu1 %v537_v6  ;;  %v531_v10 = vpop.f32.mrb[3].mxu1  ;;  %v540_v11 = vadd.f32 %v907_v9, %v850_v4 }
 0x1c7   : > { %591 = vmax.xlane.f32.xlu0 %v529_v8  ;;  %v532_v12 = vadd.f32 %v850_v4, %v531_v10 }
 0x1ca   : > { %597 = vmax.xlane.f32.xlu1 %v540_v11 }
 0x1cb   : > { %v910_v13 = vpop.f32.mrb[4].mxu1  ;;  %593 = vmax.xlane.f32.xlu0 %v532_v12 }
 0x1cc   : > { %v553_v14 = vadd.f32 %v910_v13, %v850_v4  ;;  %v544_v15 = vpop.f32.mrb[5].mxu1 }
 0x1cd   : > { %v911_v16 = vpop.f32.mrb[6].mxu1  ;;  %v545_v19 = vadd.f32 %v850_v4, %v544_v15 }
 0x1ce   : > { %v556_v17 = vadd.f32 %v911_v16, %v850_v4  ;;  %v547_v18 = vpop.f32.mrb[7].mxu1 }
 0x1cf   : > { %603 = vmax.xlane.f32.xlu0 %v553_v14  ;;  %v548_v20 = vadd.f32 %v850_v4, %v547_v18 }
 0x1d0   : > { %605 = vmax.xlane.f32.xlu1 %v556_v17 }
 0x1d3   : > { %v914_v21 = vpop.f32.mrb[8].mxu1  ;;  %599 = vmax.xlane.f32.xlu0 %v545_v19 }
 0x1d4   : > { %v569_v22 = vadd.f32 %v914_v21, %v850_v4  ;;  %v560_v23 = vpop.f32.mrb[9].mxu1  ;;  %601 = vmax.xlane.f32.xlu1 %v548_v20 }
 0x1d5   : > { %v915_v24 = vpop.f32.mrb[10].mxu1  ;;  %v561_v27 = vadd.f32 %v850_v4, %v560_v23 }
 0x1d6   : > { %v572_v25 = vadd.f32 %v915_v24, %v850_v4  ;;  %v563_v26 = vpop.f32.mrb[11].mxu1 }
 0x1d7   : > { %611 = vmax.xlane.f32.xlu0 %v569_v22  ;;  %v1086_v28 = vadd.f32 %v850_v4, %v563_v26 }
 0x1d8   : > { %613 = vmax.xlane.f32.xlu1 %v572_v25 }
 0x1db   : > { %v918_v29 = vpop.f32.mrb[12].mxu1  ;;  %607 = vmax.xlane.f32.xlu0 %v561_v27 }
 0x1dc   : > { %v576_v30 = vpop.f32.mrb[13].mxu1  ;;  %609 = vmax.xlane.f32.xlu1 %v1086_v28  ;;  %v1094_v35 = vadd.f32 %v918_v29, %v850_v4 }
 0x1dd   : > { %v1089_v31 = vadd.f32 %v850_v4, %v576_v30  ;;  %v919_v32 = vpop.f32.mrb[14].mxu1 }
 0x1de   : > { %v579_v33 = vpop.f32.mrb[15].mxu1  ;;  %v1097_v36 = vadd.f32 %v919_v32, %v850_v4 }
 0x1df   : > { %v1091_v34 = vadd.f32 %v850_v4, %v579_v33  ;;  %615 = vmax.xlane.f32.xlu0 %v1089_v31 }
 0x1e1   : > { %617 = vmax.xlane.f32.xlu1 %v1091_v34 }
 0x1e3   : > { %619 = vmax.xlane.f32.xlu0 %v1094_v35 }
 0x1e5   : > { %621 = vmax.xlane.f32.xlu1 %v1097_v36 }
 0x253   : > { %v596_v37 = vpop.xlane.xlu1 %595 }
 0x254   : > { %v1101_v38 = vsub.f32 %v537_v6, %v596_v37  ;;  %v592_v39 = vpop.xlane.xlu0 %591 }
 0x255   : > { %v1103_v40 = vsub.f32 %v529_v8, %v592_v39 }
 0x256   : > { %v643_v41 = vmul.f32 1.442695, %v1101_v38 }
 0x257   : > { %v639_v42 = vmul.f32 1.442695, %v1103_v40  ;;  %v598_v43 = vpop.xlane.xlu1 %597 }
 0x258   : > { %939 = vpow2.f32 %v643_v41  ;;  %v1107_v44 = vsub.f32 %v540_v11, %v598_v43  ;;  %v594_v45 = vpop.xlane.xlu0 %593 }
 0x259   : > { %v1109_v46 = vsub.f32 %v532_v12, %v594_v45  ;;  %941 = vpow2.f32 %v639_v42 }
 0x25a   : > { %v645_v47 = vmul.f32 1.442695, %v1107_v44 }
 0x25b   : > { %v641_v48 = vmul.f32 1.442695, %v1109_v46 }
 0x25c   : > { %943 = vpow2.f32 %v645_v47  ;;  %v604_v49 = vpop.xlane.xlu0 %603 }
 0x25d   : > { %v1113_v50 = vsub.f32 %v553_v14, %v604_v49  ;;  %v606_v51 = vpop.xlane.xlu1 %605  ;;  %945 = vpow2.f32 %v641_v48 }
 0x25e   : > { %v1115_v52 = vsub.f32 %v556_v17, %v606_v51 }
 0x25f   : > { %v651_v53 = vmul.f32 1.442695, %v1113_v50 }
 0x260   : > { %v653_v54 = vmul.f32 1.442695, %v1115_v52  ;;  %v600_v55 = vpop.xlane.xlu0 %599 }
 0x261   : > { %947 = vpow2.f32 %v651_v53  ;;  %v1119_v56 = vsub.f32 %v545_v19, %v600_v55  ;;  %v602_v57 = vpop.xlane.xlu1 %601 }
 0x262   : > { %v940_v58 = vpop.eup %939  ;;  %v1121_v59 = vsub.f32 %v548_v20, %v602_v57  ;;  %949 = vpow2.f32 %v653_v54 }
 0x263   : > { %v647_v60 = vmul.f32 1.442695, %v1119_v56  ;;  %675 = vadd.xlane.f32.xlu0 %v940_v58  ;;  %v942_v63 = vpop.eup %941 }
 0x264   : > { %v649_v61 = vmul.f32 1.442695, %v1121_v59  ;;  %v612_v62 = vpop.xlane.xlu0 %611 }
 0x265   : > { %951 = vpow2.f32 %v647_v60  ;;  %v1125_v0 = vsub.f32 %v569_v22, %v612_v62  ;;  %v614_v1 = vpop.xlane.xlu1 %613 }
 0x266   : > { %v944_v2 = vpop.eup %943  ;;  %v1127_v3 = vsub.f32 %v572_v25, %v614_v1  ;;  %953 = vpow2.f32 %v649_v61 }
 0x267   : > { %v659_v4 = vmul.f32 1.442695, %v1125_v0  ;;  %677 = vadd.xlane.f32.xlu1 %v944_v2  ;;  %671 = vadd.xlane.f32.xlu0 %v942_v63  ;;  %v946_v9 = vpop.eup %945 }
 0x268   : > { %v661_v5 = vmul.f32 1.442695, %v1127_v3  ;;  %v608_v6 = vpop.xlane.xlu0 %607 }
 0x269   : > { %955 = vpow2.f32 %v659_v4  ;;  %v1131_v7 = vsub.f32 %v561_v27, %v608_v6  ;;  %v610_v8 = vpop.xlane.xlu1 %609 }
 0x26a   : > { %v1134_v10 = vsub.f32 %v1086_v28, %v610_v8  ;;  %957 = vpow2.f32 %v661_v5 }
 0x26b   : > { %v948_v11 = vpop.eup %947  ;;  %v655_v12 = vmul.f32 1.442695, %v1131_v7  ;;  %673 = vadd.xlane.f32.xlu1 %v946_v9 }
 0x26c   : > { %v657_v13 = vmul.f32 1.442695, %v1134_v10  ;;  %683 = vadd.xlane.f32.xlu0 %v948_v11  ;;  %v616_v14 = vpop.xlane.xlu0 %615  ;;  %v950_v16 = vpop.eup %949 }
 0x26d   : > { %959 = vpow2.f32 %v655_v12  ;;  %v1139_v15 = vsub.f32 %v1089_v31, %v616_v14 }
 0x26e   : > { %v618_v17 = vpop.xlane.xlu1 %617  ;;  %961 = vpow2.f32 %v657_v13 }
 0x26f   : > { %v952_v18 = vpop.eup %951  ;;  %v663_v19 = vmul.f32 1.442695, %v1139_v15  ;;  %v1143_v20 = vsub.f32 %v1091_v34, %v618_v17  ;;  %685 = vadd.xlane.f32.xlu1 %v950_v16 }
 0x270   : > { %679 = vadd.xlane.f32.xlu0 %v952_v18  ;;  %v620_v21 = vpop.xlane.xlu0 %619  ;;  %v954_v24 = vpop.eup %953 }
 0x271   : > { %963 = vpow2.f32 %v663_v19  ;;  %v665_v22 = vmul.f32 1.442695, %v1143_v20  ;;  %v1147_v23 = vsub.f32 %v1094_v35, %v620_v21 }
 0x272   : > { %v622_v25 = vpop.xlane.xlu1 %621 }
 0x273   : > { %v956_v26 = vpop.eup %955  ;;  %965 = vpow2.f32 %v665_v22  ;;  %v667_v27 = vmul.f32 1.442695, %v1147_v23  ;;  %v1151_v28 = vsub.f32 %v1097_v36, %v622_v25  ;;  %681 = vadd.xlane.f32.xlu1 %v954_v24 }
 0x274   : > { %691 = vadd.xlane.f32.xlu0 %v956_v26  ;;  %v958_v30 = vpop.eup %957 }
 0x275   : > { %967 = vpow2.f32 %v667_v27  ;;  %v669_v29 = vmul.f32 1.442695, %v1151_v28 }
 0x277   : > { %v960_v31 = vpop.eup %959  ;;  %969 = vpow2.f32 %v669_v29  ;;  %693 = vadd.xlane.f32.xlu1 %v958_v30 }
 0x278   : > { %687 = vadd.xlane.f32.xlu0 %v960_v31  ;;  %v962_v32 = vpop.eup %961 }
 0x27b   : > { %v964_v33 = vpop.eup %963  ;;  %689 = vadd.xlane.f32.xlu1 %v962_v32 }
 0x27c   : > { %695 = vadd.xlane.f32.xlu0 %v964_v33 }
 0x27d   : > { %v966_v34 = vpop.eup %965 }
 0x27f   : > { %v968_v35 = vpop.eup %967  ;;  %697 = vadd.xlane.f32.xlu1 %v966_v34 }
 0x280   : > { %699 = vadd.xlane.f32.xlu0 %v968_v35 }
 0x281   : > { %v970_v36 = vpop.eup %969 }
 0x283   : > { %701 = vadd.xlane.f32.xlu1 %v970_v36 }
 0x2f0   : > { %v676_v37 = vpop.xlane.xlu0 %675 }
 0x2f1   : > { %971 = vlog2.f32 %v676_v37 }
 0x2f4   : > { %v678_v39 = vpop.xlane.xlu1 %677  ;;  %v672_v41 = vpop.xlane.xlu0 %671 }
 0x2f5   : > { %973 = vlog2.f32 %v678_v39 }
 0x2f6   : > { %975 = vlog2.f32 %v672_v41 }
 0x2f8   : > { %v674_v42 = vpop.xlane.xlu1 %673 }
 0x2f9   : > { %977 = vlog2.f32 %v674_v42  ;;  %v684_v43 = vpop.xlane.xlu0 %683 }
 0x2fa   : > { %979 = vlog2.f32 %v684_v43 }
 0x2fb   : > { %v972_v45 = vpop.eup %971 }
 0x2fc   : > { %v708_v47 = vmul.f32 0.6931472, %v972_v45  ;;  %v686_v48 = vpop.xlane.xlu1 %685 }
 0x2fd   : > { %981 = vlog2.f32 %v686_v48  ;;  %v680_v49 = vpop.xlane.xlu0 %679 }
 0x2fe   : > { %v737_v51 = vsub.f32 %v1101_v38, %v708_v47  ;;  %983 = vlog2.f32 %v680_v49 }
 0x2ff   : > { %v974_v53 = vpop.eup %973 }
 0x300   : > { %v976_v54 = vpop.eup %975  ;;  %753 = vst [vmem:[%s1158_s13 + $0x10] sm:$0xff] %v737_v51  ;;  %v710_v55 = vmul.f32 0.6931472, %v974_v53  ;;  %v682_v57 = vpop.xlane.xlu1 %681 }
 0x301   : > { %v704_v58 = vmul.f32 0.6931472, %v976_v54  ;;  %985 = vlog2.f32 %v682_v57  ;;  %v692_v60 = vpop.xlane.xlu0 %691 }
 0x302   : > { %v738_v61 = vsub.f32 %v1107_v44, %v710_v55  ;;  %987 = vlog2.f32 %v692_v60 }
 0x303   : > { %v978_v62 = vpop.eup %977  ;;  %v735_v63 = vsub.f32 %v1103_v40, %v704_v58 }
 0x304   : > { %v980_v1 = vpop.eup %979  ;;  %754 = vst [vmem:[%s1158_s13 + $0x18] sm:$0xff] %v738_v61  ;;  %v706_v38 = vmul.f32 0.6931472, %v978_v62  ;;  %v694_v2 = vpop.xlane.xlu1 %693 }
 0x305   : > { %751 = vst [vmem:[%s1158_s13] sm:$0xff] %v735_v63  ;;  %v716_v4 = vmul.f32 0.6931472, %v980_v1  ;;  %989 = vlog2.f32 %v694_v2  ;;  %v688_v5 = vpop.xlane.xlu0 %687 }
 0x306   : > { %v736_v6 = vsub.f32 %v1109_v46, %v706_v38  ;;  %991 = vlog2.f32 %v688_v5 }
 0x307   : > { %v982_v8 = vpop.eup %981  ;;  %v741_v44 = vsub.f32 %v1113_v50, %v716_v4 }
 0x308   : > { %v984_v9 = vpop.eup %983  ;;  %752 = vst [vmem:[%s1158_s13 + $0x8] sm:$0xff] %v736_v6  ;;  %v718_v40 = vmul.f32 0.6931472, %v982_v8  ;;  %v690_v11 = vpop.xlane.xlu1 %689 }
 0x309   : > { %757 = vst [vmem:[%s1158_s13 + $0x30] sm:$0xff] %v741_v44  ;;  %v712_v12 = vmul.f32 0.6931472, %v984_v9  ;;  %993 = vlog2.f32 %v690_v11  ;;  %v696_v13 = vpop.xlane.xlu0 %695 }
 0x30a   : > { %v742_v14 = vsub.f32 %v1115_v52, %v718_v40  ;;  %995 = vlog2.f32 %v696_v13 }
 0x30b   : > { %v986_v16 = vpop.eup %985  ;;  %v739_v46 = vsub.f32 %v1119_v56, %v712_v12 }
 0x30c   : > { %v988_v17 = vpop.eup %987  ;;  %758 = vst [vmem:[%s1158_s13 + $0x38] sm:$0xff] %v742_v14  ;;  %v714_v50 = vmul.f32 0.6931472, %v986_v16  ;;  %v698_v18 = vpop.xlane.xlu1 %697 }
 0x30d   : > { %755 = vst [vmem:[%s1158_s13 + $0x20] sm:$0xff] %v739_v46  ;;  %v724_v19 = vmul.f32 0.6931472, %v988_v17  ;;  %997 = vlog2.f32 %v698_v18  ;;  %v700_v21 = vpop.xlane.xlu0 %699 }
 0x30e   : > { %v740_v22 = vsub.f32 %v1121_v59, %v714_v50  ;;  %999 = vlog2.f32 %v700_v21 }
 0x30f   : > { %v990_v52 = vpop.eup %989  ;;  %v745_v24 = vsub.f32 %v1125_v0, %v724_v19 }
 0x310   : > { %v992_v25 = vpop.eup %991  ;;  %756 = vst [vmem:[%s1158_s13 + $0x28] sm:$0xff] %v740_v22  ;;  %v726_v56 = vmul.f32 0.6931472, %v990_v52  ;;  %v702_v26 = vpop.xlane.xlu1 %701 }
 0x311   : > { %761 = vst [vmem:[%s1158_s13 + $0x50] sm:$0xff] %v745_v24  ;;  %v720_v27 = vmul.f32 0.6931472, %v992_v25  ;;  %1001 = vlog2.f32 %v702_v26 }
 0x312   : > { %v746_v29 = vsub.f32 %v1127_v3, %v726_v56 }
 0x313   : > { %v994_v30 = vpop.eup %993  ;;  %v743_v31 = vsub.f32 %v1131_v7, %v720_v27 }
 0x314   : > { %v996_v59 = vpop.eup %995  ;;  %762 = vst [vmem:[%s1158_s13 + $0x58] sm:$0xff] %v746_v29  ;;  %v722_v32 = vmul.f32 0.6931472, %v994_v30 }
 0x315   : > { %759 = vst [vmem:[%s1158_s13 + $0x40] sm:$0xff] %v743_v31  ;;  %v728_v0 = vmul.f32 0.6931472, %v996_v59 }
 0x316   : > { %v744_v33 = vsub.f32 %v1134_v10, %v722_v32 }
 0x317   : > { %v998_v34 = vpop.eup %997  ;;  %v747_v35 = vsub.f32 %v1139_v15, %v728_v0 }
 0x318   : > { %v1000_v36 = vpop.eup %999  ;;  %760 = vst [vmem:[%s1158_s13 + $0x48] sm:$0xff] %v744_v33  ;;  %v730_v37 = vmul.f32 0.6931472, %v998_v34 }
 0x319   : > { %763 = vst [vmem:[%s1158_s13 + $0x60] sm:$0xff] %v747_v35  ;;  %v732_v3 = vmul.f32 0.6931472, %v1000_v36 }
 0x31a   : > { %v748_v7 = vsub.f32 %v1143_v20, %v730_v37 }
 0x31b   : > { %v1002_v39 = vpop.eup %1001  ;;  %v749_v41 = vsub.f32 %v1147_v23, %v732_v3 }
 0x31c   : > { %764 = vst [vmem:[%s1158_s13 + $0x68] sm:$0xff] %v748_v7  ;;  %v734_v42 = vmul.f32 0.6931472, %v1002_v39 }
 0x31d   : > { %765 = vst [vmem:[%s1158_s13 + $0x70] sm:$0xff] %v749_v41 }
 0x31e   : > { %v750_v43 = vsub.f32 %v1151_v28, %v734_v42 }
 0x320   : > { %766 = vst [vmem:[%s1158_s13 + $0x78] sm:$0xff] %v750_v43 }
 0x321 PF: > { %s15_s18 = sadd.s32 1, %s1009_s18  }
 0x322   : > { %p12_p4 = scmp.ge.s32.totalorder %s15_s18, 4  }
 0x324   :  { %14 = sbr.rel (!%p12_p4) target bundleno = 1 (0x1), region = 70 }

</bundles_post_ra>
